<compile_context>
chip_gen: v7x
topology: tpu7x:2x2x1
jax: 0.10.0
libtpu: 0.0.40
codegen_flags: <defaults>
</compile_context>

<pallas_src>
import numpy as np
import jax
import jax.numpy as jnp
from jax.experimental import pallas as pl
from jax.experimental.pallas import tpu as pltpu

# ----------------------------- rules (synthetic env_bldr) --------------------
N_RANKS = 13
N_SUITS = 4
N_CARDS = N_RANKS * N_SUITS          # 52
N_HOLE_CARDS = 2
ALL_ROUNDS_LIST = [0, 1, 2, 3]       # preflop, flop, turn, river
CARDS_DEALT_IN_TRANSITION_TO = {0: 0, 1: 3, 2: 1, 3: 1}   # board cards per round

N_GROUPS = len(ALL_ROUNDS_LIST)      # 4 card groups (hole + flop + turn + river)
GROUP_CLASS_PAD = 64                 # 52 card classes padded to 64 per group

# slot -> group map: 2 hole-card slots -> group 0, then one group per round with n>0
_SLOT_GROUPS = [0] * N_HOLE_CARDS
_g = 1
for _round in ALL_ROUNDS_LIST:
    _n = CARDS_DEALT_IN_TRANSITION_TO[_round]
    if _n > 0:
        _SLOT_GROUPS += [_g] * _n
        _g += 1
SLOT_CLASS_OFFSETS = tuple(g * GROUP_CLASS_PAD for g in _SLOT_GROUPS)   # (0,0,64,64,64,128,192)
N_SLOTS = len(SLOT_CLASS_OFFSETS)                                       # 7
N_CLASSES_TOTAL = N_GROUPS * GROUP_CLASS_PAD                            # 256
_HALF_CLASSES = N_CLASSES_TOTAL // 2                                    # 128 = one lane vreg

# Slots partitioned by which 128-class half they can hit (halves compare width).
_LOW_SLOTS = tuple((j, off) for j, off in enumerate(SLOT_CLASS_OFFSETS)
                   if off < _HALF_CLASSES)                              # hole + flop
_HIGH_SLOTS = tuple((j, off - _HALF_CLASSES) for j, off in enumerate(SLOT_CLASS_OFFSETS)
                    if off >= _HALF_CLASSES)                            # turn + river


def _round_up(x, m):
    return (x + m - 1) // m * m


# ----------------------------- chip-dependent knobs ---------------------------
def _tpu_kind():
    try:
        return jax.devices()[0].device_kind.lower()
    except Exception:
        return ""


_KIND = _tpu_kind()
# bf16 VALU exists on v6e / v7x; v5e and older emulate bf16 VPU ops -> f32 counts there.
_COUNT_DTYPE = jnp.bfloat16 if any(t in _KIND for t in ("v6", "v7", "7x")) else jnp.float32
# v7x has 2 TensorCores per chip: ensure the ("parallel",) grid has >= 2 steps.
_MIN_TILES = 2 if any(t in _KIND for t in ("v7", "7x")) else 1


# ----------------------------- Pallas kernel ---------------------------------
def _make_fused_card_emb_kernel(count_dtype):
    def kernel(cards_ref, tab_ref, o_ref):
        """All 4 card groups: per-half one-hot counts -> one bf16 MXU matmul."""
        cards = cards_ref[...]                                 # (tb, N_SLOTS) int32
        tb = cards.shape[0]
        iota = jax.lax.broadcasted_iota(jnp.int32, (tb, _HALF_CLASSES), 1)

        def one_hot(slot, rel_off):
            idx = cards[:, slot:slot + 1]                      # (tb, 1)
            if rel_off:
                # remap invalid (negative) ids so they never alias a real class
                idx = jnp.where(idx >= 0, idx + rel_off, -1)
            return (idx == iota).astype(count_dtype)           # (tb, 128)

        # Low half (classes 0..127): init from first slot, add the rest.
        (j0, o0), *rest_lo = _LOW_SLOTS
        cnt_lo = one_hot(j0, o0)
        for j, off in rest_lo:
            cnt_lo = cnt_lo + one_hot(j, off)
        # High half (classes 128..255).
        (j0, o0), *rest_hi = _HIGH_SLOTS
        cnt_hi = one_hot(j0, o0)
        for j, off in rest_hi:
            cnt_hi = cnt_hi + one_hot(j, off)

        # Counts are small integers -> bf16 cast is exact; feeds the bf16 MXU directly.
        cnt = jnp.concatenate([cnt_lo.astype(jnp.bfloat16),
                               cnt_hi.astype(jnp.bfloat16)], axis=1)   # (tb, 256)
        # Single lane-dense MXU matmul + store: (tb,256)bf16 @ (256,W)bf16 -> (tb,W)f32
        o_ref[...] = jnp.dot(cnt, tab_ref[...], preferred_element_type=jnp.float32)
    return kernel


def _pick_batch_tile(bs, max_tile, min_tiles):
    bs8 = _round_up(max(bs, 1), 8)
    n_tiles = max(pl.cdiv(bs8, max_tile), min_tiles)
    return _round_up(pl.cdiv(bs8, n_tiles), 8)


def fused_card_embedding(cards, folded_table, *, out_width=None, max_tile=512):
    """cards: (bs, N_SLOTS) int32 card ids (-1 = undealt).
    folded_table: (256, W_pad) bf16 block-diagonal folded table, W_pad % 128 == 0."""
    bs, n_slots = cards.shape
    n_classes, w_pad = folded_table.shape
    assert n_slots == N_SLOTS and n_classes == N_CLASSES_TOTAL and w_pad % 128 == 0
    if out_width is None:
        out_width = w_pad
    if folded_table.dtype != jnp.bfloat16:          # caller should precompute bf16 once
        folded_table = folded_table.astype(jnp.bfloat16)

    tb = _pick_batch_tile(bs, max_tile, _MIN_TILES)  # fat, sublane-aligned batch tile
    bs_pad = _round_up(bs, tb)
    cards = cards.astype(jnp.int32)
    if bs_pad != bs:
        cards = jnp.pad(cards, ((0, bs_pad - bs), (0, 0)), constant_values=-1)

    out = pl.pallas_call(
        _make_fused_card_emb_kernel(_COUNT_DTYPE),
        out_shape=jax.ShapeDtypeStruct((bs_pad, w_pad), jnp.float32),
        grid=(bs_pad // tb,),
        in_specs=[
            pl.BlockSpec((tb, n_slots), lambda i: (i, 0)),
            # Constant index_map -> fetched once across the grid.
            # TODO(synk): pipeline_mode=pl.Buffered(1) would drop the table's second VMEM
            # buffer (negligible at this table size); skipped for lowering portability.
            pl.BlockSpec((n_classes, w_pad), lambda i: (0, 0)),
        ],
        out_specs=pl.BlockSpec((tb, w_pad), lambda i: (i, 0)),
        compiler_params=pltpu.CompilerParams(dimension_semantics=("parallel",)),
    )(cards, folded_table)
    return out[:bs, :out_width]


# ----------------------------- module (JAX glue) ------------------------------
class CardEmbeddingJAX:
    def __init__(self, dim, board_start, key):
        self._dim = dim
        self._board_start = board_start
        n_board_cards = sum(CARDS_DEALT_IN_TRANSITION_TO.values())          # 5
        self._board_stop = board_start + 3 * n_board_cards                  # 3 floats / board card
        self._n_card_types = N_GROUPS

        # nn.Embedding default init ~ N(0, 1), deterministic per table.
        keys = jax.random.split(key, 3 * self._n_card_types)
        self.params = []
        for t in range(self._n_card_types):
            rk, sk, ck = keys[3 * t], keys[3 * t + 1], keys[3 * t + 2]
            self.params.append((
                jax.random.normal(rk, (N_RANKS, dim), jnp.float32),
                jax.random.normal(sk, (N_SUITS, dim), jnp.float32),
                jax.random.normal(ck, (N_CARDS, dim), jnp.float32),
            ))

        # Fold rank/suit tables into the card table and stack groups block-
        # diagonally: class rows [g*64, g*64+52), lane cols [g*dim, (g+1)*dim).
        # Lane width padded to a multiple of 128 for unmasked lane-dense stores.
        # TODO(synk): fold assumes the obs encodes rank = card // N_SUITS,
        # suit = card % N_SUITS, and that rank/suit/card are undealt together
        # (holds for PokerRL's board encoding and hole-card LUT).
        W = N_GROUPS * dim
        self._w_pad = _round_up(W, 128)
        cid = jnp.arange(N_CARDS)
        big = jnp.zeros((N_CLASSES_TOTAL, self._w_pad), jnp.float32)
        for t, (rt, st, ct) in enumerate(self.params):
            combined = ct + rt[cid // N_SUITS] + st[cid % N_SUITS]          # (52, dim)
            big = big.at[t * GROUP_CLASS_PAD:t * GROUP_CLASS_PAD + N_CARDS,
                         t * dim:(t + 1) * dim].set(combined)
        # Precompute the bf16 table ONCE (MXU-native; half the table DMA/VMEM of f32).
        self._folded_table = big.astype(jnp.bfloat16)

        # LUT_IDX_2_HOLE_CARDS: enumerate all C(52, 2) hole-card combos.
        combos = [(a, b) for a in range(N_CARDS) for b in range(a + 1, N_CARDS)]
        self._lut_range_idx_to_1d = jnp.asarray(np.asarray(combos, dtype=np.int32))
        # LUT_1DCARD_2_2DCARD: card -> (rank, suit)
        c = np.arange(N_CARDS)
        self._lut_1d_to_2d = jnp.asarray(
            np.stack([c // N_SUITS, c % N_SUITS], axis=1).astype(np.int32))

    @property
    def out_size(self):
        return self._n_card_types * self._dim

    def _gather_cards(self, pub_obses, range_idxs):
        # LUT gathers / slicing are glue (done on CPU in the torch code anyway).
        priv_1d = self._lut_range_idx_to_1d[range_idxs].astype(jnp.int32)   # (bs, 2)
        board = jnp.round(
            pub_obses[:, self._board_start:self._board_stop]).astype(jnp.int32)
        board_cards = board[:, 2::3]                                        # (bs, 5) 1d card ids
        all_cards = jnp.concatenate([priv_1d, board_cards], axis=1)         # (bs, N_SLOTS)
        assert all_cards.shape[1] == N_SLOTS
        return all_cards

    def __call__(self, pub_obses, range_idxs):
        cards = self._gather_cards(pub_obses, range_idxs)
        return fused_card_embedding(cards, self._folded_table,
                                    out_width=self.out_size)                # (bs, 4*dim)


# ----------------------------- pure-JAX references ----------------------------
def _group_ref(ranks, suits, cards, rt, st, ct):
    def emb(idx, tab):
        valid = (idx >= 0).astype(jnp.float32)[..., None]
        return tab[jnp.clip(idx, 0, None)] * valid
    e = emb(ranks, rt) + emb(suits, st) + emb(cards, ct)
    return e.sum(axis=1)


def _reference_f32(model, pub_obses, range_idxs):
    """Faithful f32 re-implementation of the PyTorch module (no bf16 table)."""
    priv_1d = model._lut_range_idx_to_1d[range_idxs]
    priv_2d = model._lut_1d_to_2d[priv_1d]
    board = jnp.round(
        pub_obses[:, model._board_start:model._board_stop]).astype(jnp.int32)
    batches = [(priv_2d[:, :, 0], priv_2d[:, :, 1], priv_1d)]
    off = 0
    for round_ in ALL_ROUNDS_LIST:
        n = CARDS_DEALT_IN_TRANSITION_TO[round_]
        if n > 0:
            batches.append((board[:, off:off + 3 * n:3],
                            board[:, off + 1:off + 1 + 3 * n:3],
                            board[:, off + 2:off + 2 + 3 * n:3]))
            off += 3 * n
    return jnp.concatenate(
        [_group_ref(r, s, c, *p) for p, (r, s, c) in zip(model.params, batches)], axis=1)


def _reference_folded(model, pub_obses, range_idxs):
    """Same math as the kernel (bf16 folded table) via plain gathers: exact check
    of the one-hot / masking / sum / concat logic."""
    cards = model._gather_cards(pub_obses, range_idxs)
    tab = model._folded_table.astype(jnp.float32)
    out = jnp.zeros((cards.shape[0], tab.shape[1]), jnp.float32)
    for j, off in enumerate(SLOT_CLASS_OFFSETS):
        idx = cards[:, j]
        valid = (idx >= 0).astype(jnp.float32)[:, None]
        out = out + tab[jnp.clip(idx, 0, None) + off] * valid
    return out[:, :model.out_size]


# ----------------------------- main -------------------------------------------
if __name__ == "__main__":
    bs = 16
    dim = 32                                  # 4*dim = 128 -> lane-dense output, no width pad
    board_start = 5
    obs_dim = board_start + 3 * 5 + 4         # prefix + 5 board cards * 3 + suffix = 24

    key = jax.random.PRNGKey(0)
    k_params, k_range, k_board = jax.random.split(key, 3)

    model = CardEmbeddingJAX(dim=dim, board_start=board_start, key=k_params)

    # range_idxs: which hole-card combo each batch element holds.
    range_idxs = jax.random.randint(k_range, (bs,), 0, N_CARDS * (N_CARDS - 1) // 2,
                                    dtype=jnp.int32)

    # Build pub_obses: board section holds (rank, suit, card) per board card,
    # -1 for not-yet-dealt cards (second half of batch only has the flop dealt).
    board_cards = np.asarray(
        jax.random.randint(k_board, (bs, 5), 0, N_CARDS, dtype=jnp.int32))
    board_sec = np.zeros((bs, 15), dtype=np.float32)
    for b in range(bs):
        for j in range(5):
            c = int(board_cards[b, j])
            dealt = (j < 3) or (b < bs // 2)
            board_sec[b, 3 * j + 0] = float(c // N_SUITS) if dealt else -1.0
            board_sec[b, 3 * j + 1] = float(c % N_SUITS) if dealt else -1.0
            board_sec[b, 3 * j + 2] = float(c) if dealt else -1.0
    pub_obses_np = np.zeros((bs, obs_dim), dtype=np.float32)
    pub_obses_np[:, board_start:board_start + 15] = board_sec
    pub_obses = jnp.asarray(pub_obses_np)

    out = jax.block_until_ready(model(pub_obses, range_idxs))
    assert out.shape == (bs, model.out_size), out.shape

    # Exact check of kernel logic vs the same bf16 folded-table math.
    ref_folded = jax.block_until_ready(_reference_folded(model, pub_obses, range_idxs))
    np.testing.assert_allclose(np.asarray(out), np.asarray(ref_folded),
                               rtol=1e-4, atol=1e-4)

    # Check vs the faithful f32 PyTorch-style reference; tolerance relaxed only for
    # the bf16 quantization of the folded embedding table (~1e-3 relative).
    ref_f32 = jax.block_until_ready(_reference_f32(model, pub_obses, range_idxs))
    np.testing.assert_allclose(np.asarray(out), np.asarray(ref_f32),
                               rtol=2e-2, atol=1e-1)

    print("KERNEL_OK")
</pallas_src>

<mosaic_0001>
module attributes {stable_mosaic.version = 11 : i64} {
  func.func @kernel(%arg0: i32, %arg1: memref<16x7xi32, #tpu.memory_space<vmem>>, %arg2: memref<256x128xbf16, #tpu.memory_space<vmem>>, %arg3: memref<16x128xf32, #tpu.memory_space<vmem>>) attributes {dimension_semantics = [#tpu.dimension_semantics<parallel>], iteration_bounds = array<i64: 1>, scalar_prefetch = 0 : i64, scratch_operands = 0 : i64, tpu.core_type = #tpu.core_type<tc>, window_params = [{transform_indices = @transform_0, window_bounds = array<i64: 16, 7>}, {pipeline_mode = #tpu.pipeline_mode<synchronous>, transform_indices = @transform_1, window_bounds = array<i64: 256, 128>}, {transform_indices = @transform_2, window_bounds = array<i64: 16, 128>}]} {
    %c0 = arith.constant 0 : index
    %c0_0 = arith.constant 0 : index
    %0 = vector.load %arg1[%c0, %c0_0] : memref<16x7xi32, #tpu.memory_space<vmem>>, vector<16x7xi32>
    %1 = tpu.iota {dimensions = array<i32: 1>} : vector<16x128xi32>
    %2 = vector.extract_strided_slice %0 {offsets = [0, 0], sizes = [16, 1], strides = [1, 1]} : vector<16x7xi32> to vector<16x1xi32>
    %3 = vector.broadcast %2 : vector<16x1xi32> to vector<16x128xi32>
    %4 = arith.cmpi eq, %3, %1 : vector<16x128xi32>
    %5 = arith.extui %4 : vector<16x128xi1> to vector<16x128xi32>
    %6 = arith.sitofp %5 : vector<16x128xi32> to vector<16x128xf32>
    %7 = vector.extract_strided_slice %0 {offsets = [0, 1], sizes = [16, 1], strides = [1, 1]} : vector<16x7xi32> to vector<16x1xi32>
    %8 = vector.broadcast %7 : vector<16x1xi32> to vector<16x128xi32>
    %9 = arith.cmpi eq, %8, %1 : vector<16x128xi32>
    %10 = arith.extui %9 : vector<16x128xi1> to vector<16x128xi32>
    %11 = arith.sitofp %10 : vector<16x128xi32> to vector<16x128xf32>
    %12 = arith.addf %6, %11 : vector<16x128xf32>
    %13 = vector.extract_strided_slice %0 {offsets = [0, 2], sizes = [16, 1], strides = [1, 1]} : vector<16x7xi32> to vector<16x1xi32>
    %c0_i32 = arith.constant 0 : i32
    %14 = vector.broadcast %c0_i32 : i32 to vector<16x1xi32>
    %15 = arith.cmpi sge, %13, %14 : vector<16x1xi32>
    %c64_i32 = arith.constant 64 : i32
    %16 = vector.broadcast %c64_i32 : i32 to vector<16x1xi32>
    %17 = arith.addi %13, %16 : vector<16x1xi32>
    %c-1_i32 = arith.constant -1 : i32
    %18 = vector.broadcast %c-1_i32 : i32 to vector<16x1xi32>
    %19 = arith.select %15, %17, %18 : vector<16x1xi1>, vector<16x1xi32>
    %20 = vector.broadcast %19 : vector<16x1xi32> to vector<16x128xi32>
    %21 = arith.cmpi eq, %20, %1 : vector<16x128xi32>
    %22 = arith.extui %21 : vector<16x128xi1> to vector<16x128xi32>
    %23 = arith.sitofp %22 : vector<16x128xi32> to vector<16x128xf32>
    %24 = arith.addf %12, %23 : vector<16x128xf32>
    %25 = vector.extract_strided_slice %0 {offsets = [0, 3], sizes = [16, 1], strides = [1, 1]} : vector<16x7xi32> to vector<16x1xi32>
    %c0_i32_1 = arith.constant 0 : i32
    %26 = vector.broadcast %c0_i32_1 : i32 to vector<16x1xi32>
    %27 = arith.cmpi sge, %25, %26 : vector<16x1xi32>
    %c64_i32_2 = arith.constant 64 : i32
    %28 = vector.broadcast %c64_i32_2 : i32 to vector<16x1xi32>
    %29 = arith.addi %25, %28 : vector<16x1xi32>
    %c-1_i32_3 = arith.constant -1 : i32
    %30 = vector.broadcast %c-1_i32_3 : i32 to vector<16x1xi32>
    %31 = arith.select %27, %29, %30 : vector<16x1xi1>, vector<16x1xi32>
    %32 = vector.broadcast %31 : vector<16x1xi32> to vector<16x128xi32>
    %33 = arith.cmpi eq, %32, %1 : vector<16x128xi32>
    %34 = arith.extui %33 : vector<16x128xi1> to vector<16x128xi32>
    %35 = arith.sitofp %34 : vector<16x128xi32> to vector<16x128xf32>
    %36 = arith.addf %24, %35 : vector<16x128xf32>
    %37 = vector.extract_strided_slice %0 {offsets = [0, 4], sizes = [16, 1], strides = [1, 1]} : vector<16x7xi32> to vector<16x1xi32>
    %c0_i32_4 = arith.constant 0 : i32
    %38 = vector.broadcast %c0_i32_4 : i32 to vector<16x1xi32>
    %39 = arith.cmpi sge, %37, %38 : vector<16x1xi32>
    %c64_i32_5 = arith.constant 64 : i32
    %40 = vector.broadcast %c64_i32_5 : i32 to vector<16x1xi32>
    %41 = arith.addi %37, %40 : vector<16x1xi32>
    %c-1_i32_6 = arith.constant -1 : i32
    %42 = vector.broadcast %c-1_i32_6 : i32 to vector<16x1xi32>
    %43 = arith.select %39, %41, %42 : vector<16x1xi1>, vector<16x1xi32>
    %44 = vector.broadcast %43 : vector<16x1xi32> to vector<16x128xi32>
    %45 = arith.cmpi eq, %44, %1 : vector<16x128xi32>
    %46 = arith.extui %45 : vector<16x128xi1> to vector<16x128xi32>
    %47 = arith.sitofp %46 : vector<16x128xi32> to vector<16x128xf32>
    %48 = arith.addf %36, %47 : vector<16x128xf32>
    %49 = vector.extract_strided_slice %0 {offsets = [0, 5], sizes = [16, 1], strides = [1, 1]} : vector<16x7xi32> to vector<16x1xi32>
    %50 = vector.broadcast %49 : vector<16x1xi32> to vector<16x128xi32>
    %51 = arith.cmpi eq, %50, %1 : vector<16x128xi32>
    %52 = arith.extui %51 : vector<16x128xi1> to vector<16x128xi32>
    %53 = arith.sitofp %52 : vector<16x128xi32> to vector<16x128xf32>
    %54 = vector.extract_strided_slice %0 {offsets = [0, 6], sizes = [16, 1], strides = [1, 1]} : vector<16x7xi32> to vector<16x1xi32>
    %c0_i32_7 = arith.constant 0 : i32
    %55 = vector.broadcast %c0_i32_7 : i32 to vector<16x1xi32>
    %56 = arith.cmpi sge, %54, %55 : vector<16x1xi32>
    %c64_i32_8 = arith.constant 64 : i32
    %57 = vector.broadcast %c64_i32_8 : i32 to vector<16x1xi32>
    %58 = arith.addi %54, %57 : vector<16x1xi32>
    %c-1_i32_9 = arith.constant -1 : i32
    %59 = vector.broadcast %c-1_i32_9 : i32 to vector<16x1xi32>
    %60 = arith.select %56, %58, %59 : vector<16x1xi1>, vector<16x1xi32>
    %61 = vector.broadcast %60 : vector<16x1xi32> to vector<16x128xi32>
    %62 = arith.cmpi eq, %61, %1 : vector<16x128xi32>
    %63 = arith.extui %62 : vector<16x128xi1> to vector<16x128xi32>
    %64 = arith.sitofp %63 : vector<16x128xi32> to vector<16x128xf32>
    %65 = arith.addf %53, %64 : vector<16x128xf32>
    %66 = arith.truncf %48 : vector<16x128xf32> to vector<16x128xbf16>
    %67 = arith.truncf %65 : vector<16x128xf32> to vector<16x128xbf16>
    %68 = tpu.concatenate %66, %67 in 1 : vector<16x128xbf16>, vector<16x128xbf16> -> vector<16x256xbf16>
    %c0_10 = arith.constant 0 : index
    %c0_11 = arith.constant 0 : index
    %69 = vector.load %arg2[%c0_10, %c0_11] : memref<256x128xbf16, #tpu.memory_space<vmem>>, vector<256x128xbf16>
    %cst = arith.constant dense<0.000000e+00> : vector<16x128xf32>
    %70 = tpu.matmul %68, %69, %cst {dimension_numbers = #tpu.dot_dimension_numbers<[1], [0], [0], [1], [0, 0, 1, 1], [], []>} : vector<16x256xbf16>, vector<256x128xbf16>, vector<16x128xf32> -> vector<16x128xf32>
    %c0_12 = arith.constant 0 : index
    %c0_13 = arith.constant 0 : index
    %71 = vector.load %arg3[%c0_12, %c0_13] : memref<16x128xf32, #tpu.memory_space<vmem>>, vector<16x128xf32>
    tpu.vector_store %arg3[%c0_12, %c0_13], %70 {strides = array<i32>} : memref<16x128xf32, #tpu.memory_space<vmem>>, vector<16x128xf32>,
    return
  }
  func.func @transform_0(%arg0: i32) -> (i32, i32) {
    %c0_i32 = arith.constant 0 : i32
    %c0_i32_0 = arith.constant 0 : i32
    return %arg0, %c0_i32 : i32, i32
  }
  func.func @transform_1(%arg0: i32) -> (i32, i32) {
    %c0_i32 = arith.constant 0 : i32
    %c0_i32_0 = arith.constant 0 : i32
    %c0_i32_1 = arith.constant 0 : i32
    return %c0_i32, %c0_i32_0 : i32, i32
  }
  func.func @transform_2(%arg0: i32) -> (i32, i32) {
    %c0_i32 = arith.constant 0 : i32
    %c0_i32_0 = arith.constant 0 : i32
    return %arg0, %c0_i32 : i32, i32
  }
}

</mosaic_0001>

<bundles_post_ra>
// kernel: tpu_custom_call.1
= control target key start
LH: loop header
LB: loop body
LE: loop exit
PB: predicated region body
PF: predicated region fallthrough
CT: control target
= control target key end

     0   :  { %7 = vsyncpa [#allocation3], 0  ;;  %s522_s0 = inlined_call_operand.vmem [shape: s32[16,7], index: 0, kind: input, shape index: {}]   ;;  %s523_s1 = inlined_call_operand.hbm [shape: bf16[256,128], index: 1, kind: input, shape index: {}]   ;;  %s524_s2 = inlined_call_operand.hbm [shape: f32[16,128], index: 2, kind: output, shape index: {}]  }
   0x1   :  { %8 = vsyncpa [#allocation4], 0  ;;  %s463_s9 = smov [#allocation2]   ;;  %s415_s13 = scalar_lea.hbm %s523_s1, 2048 }
   0x2   :  { %s16_s10 = sshll.u32 %s463_s9, 4  ;;  %p416_p0 = scmp.ne.s32.totalorder %s523_s1, %s415_s13  ;;  %s17_s10 = int_to_ptr.vmem [resolvable:$true] %s16_s10 }
   0x3   :  { %p419_p1 = scmp.lt.u32.totalorder %s415_s13, %s523_s1 }
   0x5   :  { %p421_p2 = pnand %p419_p1, %p416_p0 }
   0x7   :  { %424 = shalt.err (!%p421_p2)
}
   0x8   :  { %s425_s18 = scalar_lea.vmem %s17_s10, 2048  ;;  %p430_p4 = scmp.lt.s32.totalorder %s17_s10, %s17_s10 }
   0x9   :  { %p426_p3 = scmp.ne.s32.totalorder %s17_s10, %s425_s18  ;;  %p431_p5 = scmp.lt.s32.totalorder %s425_s18, %s425_s18 }
   0xb   :  { %p432_p6 = por %p431_p5, %p430_p4 }
   0xd   :  { %p433_p7 = pnand %p432_p6, %p426_p3 }
   0xf   :  { %436 = shalt.err (!%p433_p7)
}
  0x10   :  { %s464_s19 = smov 64   ;;  %s465_s20 = smov 4  }
  0x11   :  { %22 = dma.hbm_to_vmem [thread:$0]  %s523_s1, 2048, %s17_s10, [#allocation3], %s464_s19, %s464_s19, %s465_s20  }
  0x12   :  { %459 = dma.done.wait [#allocation3], 2048  }
  0x13   :  { %460 = vsyncadd [#allocation3], 4294965248  ;;  %v466_v0 = vmov 1   ;;  %v467_v1 = vmov 0   ;;  %v27_v2 = vld [vmem:[%s522_s0] sm:$0xff]  ;;  %v28_v3 = vld [vmem:[%s522_s0 + $0x8] sm:$0xff]  ;;  %v29_v36 = vlaneseq }
  0x14   :  { %388 = vset.pattern.permute.xlu1 %v466_v0  ;;  %387 = vset.pattern.permute.xlu0 %v467_v1  ;;  %vm58_vm0 = vcmp.ge.s32.totalorder %v28_v3, 0  ;;  %v60_v4 = vadd.s32 64, %v28_v3  ;;  %vm57_vm1 = vcmp.ge.s32.totalorder %v27_v2, 0  ;;  %v59_v5 = vadd.s32 64, %v27_v2  ;;  %v399_v7 = vld [vmem:[#allocation2 + $0x40] sm:$0xff]   ;;  %v401_v11 = vld [vmem:[#allocation2 + $0x48] sm:$0xff]  }
  0x15   :  { %44 = vperm.xlu1 %388, %v27_v2   ;;  %32 = vperm.xlu0 %387, %v27_v2   ;;  %v400_v9 = vld [vmem:[#allocation2] sm:$0xff]   ;;  %v468_v10 = vmov 2   ;;  %v402_v12 = vld [vmem:[#allocation2 + $0x8] sm:$0xff]   ;;  %v469_v13 = vmov 3   ;;  %v403_v14 = vld [vmem:[#allocation2 + $0x50] sm:$0xff]   ;;  %v470_v17 = vmov 5  }
  0x16   :  { %v62_v6 = vsel %vm58_vm0, %v60_v4, 4294967295  ;;  %v61_v8 = vsel %vm57_vm1, %v59_v5, 4294967295  ;;  %351 = vmatprep.subr.bf16.mxu0 %v399_v7  ;;  %v404_v15 = vld [vmem:[#allocation2 + $0x10] sm:$0xff]   ;;  %v405_v16 = vld [vmem:[#allocation2 + $0x58] sm:$0xff]   ;;  %v471_v18 = vmov 6   ;;  %v407_v20 = vld [vmem:[#allocation2 + $0x60] sm:$0xff]  }
  0x17   :  { %352 = vmatpush3.bf16.msra.mxu0 %v400_v9  ;;  %v406_v19 = vld [vmem:[#allocation2 + $0x18] sm:$0xff]   ;;  %v472_v21 = vmov 4   ;;  %v408_v22 = vld [vmem:[#allocation2 + $0x20] sm:$0xff]   ;;  %v409_v23 = vld [vmem:[#allocation2 + $0x68] sm:$0xff]   ;;  %v30_v38 = vand.u32 127, %v29_v36  ;;  %v473_v42 = vmov 0.0  }
  0x18   :  { %353 = vmatprep.subr.bf16.mxu0 %v401_v11  ;;  %v410_v24 = vld [vmem:[#allocation2 + $0x28] sm:$0xff]   ;;  %v411_v25 = vld [vmem:[#allocation2 + $0x70] sm:$0xff]   ;;  %v413_v27 = vld [vmem:[#allocation2 + $0x78] sm:$0xff]   ;;  %s474_s0 = smov [#allocation5]  }
  0x19   :  { %47 = vperm.xlu1 %388, %v28_v3   ;;  %35 = vperm.xlu0 %387, %v28_v3   ;;  %v412_v26 = vld [vmem:[#allocation2 + $0x30] sm:$0xff]   ;;  %v414_v28 = vld [vmem:[#allocation2 + $0x38] sm:$0xff]   ;;  %s309_s1 = sshll.u32 %s474_s0, 4  ;;  %s310_s1 = int_to_ptr.vmem [resolvable:$true] %s309_s1 }
  0x1a   :  { %s437_s27 = scalar_lea.vmem %s310_s1, 256  ;;  %p442_p9 = scmp.lt.s32.totalorder %s310_s1, %s310_s1 }
  0x1b   :  { %354 = vmatpush3.bf16.msra.mxu0 %v402_v12  ;;  %p438_p8 = scmp.ne.s32.totalorder %s310_s1, %s437_s27  ;;  %p443_p10 = scmp.lt.s32.totalorder %s437_s27, %s437_s27 }
  0x1c   :  { %355 = vmatprep.subr.bf16.mxu0 %v403_v14 }
  0x1d   :  { %390 = vset.pattern.permute.xlu1 %v468_v10  ;;  %389 = vset.pattern.permute.xlu0 %v468_v10  ;;  %p444_p11 = por %p443_p10, %p442_p9 }
  0x1e   :  { %67 = vperm.xlu1 %390, %v62_v6   ;;  %64 = vperm.xlu0 %389, %v61_v8  }
  0x1f   :  { %356 = vmatpush3.bf16.msra.mxu0 %v404_v15  ;;  %p445_p12 = pnand %p444_p11, %p438_p8 }
  0x20   :  { %357 = vmatprep.subr.bf16.mxu0 %v405_v16 }
  0x22   :  { %391 = vset.pattern.permute.xlu1 %v469_v13  ;;  %392 = vset.pattern.permute.xlu0 %v469_v13 }
  0x23   :  { %78 = vperm.xlu1 %391, %v61_v8   ;;  %81 = vperm.xlu0 %392, %v62_v6  }
  0x24   :  { %358 = vmatpush3.bf16.msra.mxu0 %v406_v19 }
  0x25   :  { %359 = vmatprep.subr.bf16.mxu0 %v407_v20 }
  0x27   :  { %393 = vset.pattern.permute.xlu1 %v470_v17  ;;  %394 = vset.pattern.permute.xlu0 %v471_v18 }
  0x28   :  { %106 = vperm.xlu1 %393, %v27_v2   ;;  %118 = vperm.xlu0 %394, %v61_v8  }
  0x29   :  { %360 = vmatpush3.bf16.msra.mxu0 %v408_v22 }
  0x2a   :  { %361 = vmatprep.subr.bf16.mxu0 %v409_v23 }
  0x2c   :  { %109 = vperm.xlu1 %393, %v28_v3   ;;  %397 = vset.pattern.permute.xlu0 %v472_v21 }
  0x2d   :  { %95 = vperm.xlu0 %397, %v62_v6   ;;  %362 = vmatpush3.bf16.msra.mxu0 %v410_v24 }
  0x2e   :  { %363 = vmatprep.subr.bf16.mxu0 %v411_v25 }
  0x30   :  { %395 = vset.pattern.permute.xlu1 %v471_v18 }
  0x31   :  { %121 = vperm.xlu1 %395, %v62_v6   ;;  %398 = vset.pattern.permute.xlu0 %v471_v18 }
  0x32   :  { %364 = vmatpush3.bf16.msra.mxu0 %v412_v26 }
  0x33   :  { %365 = vmatprep.subr.bf16.mxu0 %v413_v27 }
  0x35   :  { %396 = vset.pattern.permute.xlu1 %v472_v21 }
  0x36   :  { %92 = vperm.xlu1 %396, %v61_v8   ;;  %366 = vmatpush3.bf16.msra.mxu0 %v414_v28 }
  0x94   :  { %v45_v29 = vpop.permute.xlu1 %44  ;;  %v33_v30 = vpop.permute.xlu0 %32 }
  0x95   :  { %vm49_vm2 = vcmp.eq.s32.totalorder %v45_v29, %v30_v38  ;;  %vm37_vm3 = vcmp.eq.s32.totalorder %v33_v30, %v30_v38 }
  0x96   :  { %v323_v43 = vsel %vm49_vm2, 1.0, %v473_v42  ;;  %v321_v44 = vsel %vm37_vm3, 1.0, %v473_v42 }
  0x97   :  { %v55_v51 = vadd.f32 %v323_v43, %v321_v44 }
  0x98   :  { %v48_v31 = vpop.permute.xlu1 %47  ;;  %v36_v32 = vpop.permute.xlu0 %35 }
  0x99   :  { %vm50_vm4 = vcmp.eq.s32.totalorder %v48_v31, %v30_v38  ;;  %vm38_vm5 = vcmp.eq.s32.totalorder %v36_v32, %v30_v38 }
  0x9a   :  { %v324_v45 = vsel %vm50_vm4, 1.0, %v473_v42  ;;  %v322_v46 = vsel %vm38_vm5, 1.0, %v473_v42 }
  0x9b   :  { %v56_v54 = vadd.f32 %v324_v45, %v322_v46 }
  0x9d   :  { %v68_v33 = vpop.permute.xlu1 %67  ;;  %v65_v34 = vpop.permute.xlu0 %64 }
  0x9e   :  { %vm70_vm8 = vcmp.eq.s32.totalorder %v68_v33, %v30_v38  ;;  %vm69_vm9 = vcmp.eq.s32.totalorder %v65_v34, %v30_v38 }
  0x9f   :  { %v326_v52 = vsel %vm70_vm8, 1.0, %v473_v42  ;;  %v325_v53 = vsel %vm69_vm9, 1.0, %v473_v42 }
  0xa0   :  { %v76_v61 = vadd.f32 %v326_v52, %v56_v54  ;;  %v75_v62 = vadd.f32 %v325_v53, %v55_v51 }
  0xa2   :  { %v79_v35 = vpop.permute.xlu1 %78  ;;  %v82_v37 = vpop.permute.xlu0 %81 }
  0xa3   :  { %vm83_vm11 = vcmp.eq.s32.totalorder %v79_v35, %v30_v38  ;;  %vm84_vm12 = vcmp.eq.s32.totalorder %v82_v37, %v30_v38 }
  0xa4   :  { %v327_v57 = vsel %vm83_vm11, 1.0, %v473_v42  ;;  %v328_v58 = vsel %vm84_vm12, 1.0, %v473_v42 }
  0xa5   :  { %v89_v2 = vadd.f32 %v327_v57, %v75_v62  ;;  %v90_v3 = vadd.f32 %v328_v58, %v76_v61 }
  0xa7   :  { %v107_v39 = vpop.permute.xlu1 %106  ;;  %v119_v40 = vpop.permute.xlu0 %118 }
  0xa8   :  { %vm111_vm6 = vcmp.eq.s32.totalorder %v107_v39, %v30_v38  ;;  %vm123_vm7 = vcmp.eq.s32.totalorder %v119_v40, %v30_v38 }
  0xa9   :  { %v331_v48 = vsel %vm111_vm6, 1.0, %v473_v42  ;;  %v333_v49 = vsel %vm123_vm7, 1.0, %v473_v42 }
  0xaa   :  { %v129_v59 = vadd.f32 %v333_v49, %v331_v48 }
  0xab   :  { %v110_v41 = vpop.permute.xlu1 %109 }
  0xac   :  { %vm112_vm10 = vcmp.eq.s32.totalorder %v110_v41, %v30_v38  ;;  %v96_v47 = vpop.permute.xlu0 %95 }
  0xad   :  { %v332_v55 = vsel %vm112_vm10, 1.0, %v473_v42  ;;  %vm98_vm14 = vcmp.eq.s32.totalorder %v96_v47, %v30_v38 }
  0xae   :  { %v330_v63 = vsel %vm98_vm14, 1.0, %v473_v42 }
  0xaf   :  { %v104_v5 = vadd.f32 %v330_v63, %v90_v3 }
  0xb0   :  { %v122_v50 = vpop.permute.xlu1 %121 }
  0xb1   :  { %vm124_vm13 = vcmp.eq.s32.totalorder %v122_v50, %v30_v38 }
  0xb2   :  { %v334_v56 = vsel %vm124_vm13, 1.0, %v473_v42 }
  0xb3   :  { %v130_v60 = vadd.f32 %v334_v56, %v332_v55 }
  0xb5   :  { %v93_v0 = vpop.permute.xlu1 %92  ;;  %v132_v1 = vpack.c.bf16 %v130_v60, %v129_v59 }
  0xb6   :  { %vm97_vm15 = vcmp.eq.s32.totalorder %v93_v0, %v30_v38 }
  0xb7   :  { %v329_v4 = vsel %vm97_vm15, 1.0, %v473_v42  ;;  %293 = vmatprep.mubr.bf16.mxu0 %v132_v1 }
  0xb8   :  { %v103_v6 = vadd.f32 %v329_v4, %v89_v2 }
  0xba   :  { %v131_v7 = vpack.c.bf16 %v104_v5, %v103_v6 }
  0xbc   :  { %294 = vmatmul.mubr.bf16.vlgmr.msra.gmra.mrb[0].mxu0 %v131_v7 }
 0x18f   :  { %v367_v8 = vpop.f32.mrb[0].mxu0 }
 0x190   :  { %v368_v9 = vpop.f32.mrb[1].mxu0 }
 0x191   :  { %v369_v10 = vadd.f32 %v368_v9, %v367_v8  ;;  %v370_v11 = vpop.f32.mrb[2].mxu0 }
 0x192   :  { %v371_v12 = vpop.f32.mrb[3].mxu0 }
 0x193   :  { %302 = vst [vmem:[#allocation5] sm:$0xff] %v369_v10  ;;  %v372_v13 = vadd.f32 %v371_v12, %v370_v11 }
 0x195   :  { %303 = vst [vmem:[#allocation5 + $0x8] sm:$0xff] %v372_v13 }
 0x196   :  { %448 = shalt.err (!%p445_p12)
}
 0x197   :  { %s449_s30 = scalar_lea.hbm %s524_s2, 256 }
 0x198   :  { %p450_p13 = scmp.ne.s32.totalorder %s524_s2, %s449_s30  ;;  %p453_p0 = scmp.lt.u32.totalorder %s449_s30, %s524_s2 }
 0x19a   :  { %p455_p1 = pnand %p453_p0, %p450_p13 }
 0x19c   :  { %458 = shalt.err (!%p455_p1)
}
 0x19d   :  { %s475_s7 = smov 128   ;;  %s476_s8 = smov 8  }
 0x19e   :  { %315 = dma.vmem_to_hbm [thread:$0]  %s310_s1, 256, %s524_s2, [#allocation4], %s475_s7, %s475_s7, %s476_s8  }
 0x19f   :  { %461 = dma.done.wait [#allocation4], 256  }
 0x1a0   :  { %462 = vsyncadd [#allocation4], 4294967040 }
 0x1a1   :  { %319 = vsyncpa [#allocation3], 1 }
 0x1a2   :  { %320 = vsyncpa [#allocation4], 1 }

</bundles_post_ra>
